<compile_context>
chip_gen: v7x
topology: tpu7x:2x2x1
jax: 0.10.0
libtpu: 0.0.40
codegen_flags: <defaults>
</compile_context>

<pallas_src>
import numpy as np
import jax
import jax.numpy as jnp
from jax import lax
from jax.experimental import pallas as pl
from jax.experimental.pallas import tpu as pltpu

# ----------------------------- config (small) --------------------------------
DIM = 32
HEAD_DIM = 8
N_HEADS = 4
N_KV_HEADS = 2
HIDDEN_DIM = 64
NORM_EPS = 1e-5
B = 2
S = 8

_QW = N_HEADS * HEAD_DIM          # 32   query width
_KW = N_KV_HEADS * HEAD_DIM       # 16   kv width
# column layout of the fused projection weight: [q | k | v | q_swapped | k_swapped | pad]
_Q0, _K0, _V0 = 0, _QW, _QW + _KW
_QS0, _KS0 = _QW + 2 * _KW, 2 * _QW + 2 * _KW

_SCALE = HEAD_DIM ** -0.5
_REPS = N_HEADS // N_KV_HEADS

# bf16 inputs to every MXU matmul (per review, for v5e/v6e/v7x); accumulation
# and all elementwise / softmax math stay f32.
_MM_DTYPE = jnp.bfloat16


def _mm(a, b):
    return jnp.dot(a.astype(_MM_DTYPE), b.astype(_MM_DTYPE),
                   preferred_element_type=jnp.float32)


# ------------------------------ fused kernel ----------------------------------
def _block_kernel(x_ref, wqkv_ref, wo_ref, w13_ref, w2_ref,
                  cos_q_ref, sin_q_ref, cos_k_ref, sin_k_ref, o_ref):
    xf = x_ref[...]                                            # (S, D) f32

    # ---- attention branch: x + wo(attn(rmsnorm(x))) ----
    # (attention RMSNorm gain is folded into the rows of wqkv host-side)
    h = xf * lax.rsqrt(jnp.mean(xf * xf, axis=-1, keepdims=True) + NORM_EPS)

    qkv = _mm(h, wqkv_ref[...])                                # (S, 128) f32
    q = qkv[:, _Q0:_Q0 + _QW]
    k = qkv[:, _K0:_K0 + _KW]
    v = qkv[:, _V0:_V0 + _KW]
    qsw = qkv[:, _QS0:_QS0 + _QW]                              # pair-swapped q
    ksw = qkv[:, _KS0:_KS0 + _KW]                              # pair-swapped k

    # RoPE: out = x*cos + pair_swapped(x)*signed_sin.
    # The softmax scale (HEAD_DIM**-0.5) is folded into cos_q/sin_q host-side.
    q = q * cos_q_ref[...] + qsw * sin_q_ref[...]
    k = k * cos_k_ref[...] + ksw * sin_k_ref[...]

    seq = xf.shape[0]

    # One-shot head-major relayout -> (H, S, Dh).  The GQA query-head->kv-head
    # map is static; kv slices are simply reused inside the register stack.
    q_sl = [q[:, i * HEAD_DIM:(i + 1) * HEAD_DIM] for i in range(N_HEADS)]
    k_sl = [k[:, g * HEAD_DIM:(g + 1) * HEAD_DIM] for g in range(N_KV_HEADS)]
    v_sl = [v[:, g * HEAD_DIM:(g + 1) * HEAD_DIM] for g in range(N_KV_HEADS)]
    qh = jnp.stack(q_sl)                                       # (H, S, Dh)
    kh = jnp.stack([k_sl[i // _REPS] for i in range(N_HEADS)]) # (H, S, Dh)
    vh = jnp.stack([v_sl[i // _REPS] for i in range(N_HEADS)]) # (H, S, Dh)

    # Causal mask generated in-kernel (no HBM/VMEM (S,S) stream).
    qpos = lax.broadcasted_iota(jnp.int32, (seq, seq), 0)
    kpos = lax.broadcasted_iota(jnp.int32, (seq, seq), 1)
    neg = jnp.where(kpos <= qpos, 0.0, -1e9).astype(jnp.float32)

    # Head-batched attention: one dot_general for scores, one for p@v.
    s = jnp.einsum("hqd,hkd->hqk",
                   qh.astype(_MM_DTYPE), kh.astype(_MM_DTYPE),
                   preferred_element_type=jnp.float32)         # (H, S, S)
    s = s + neg[None, :, :]
    m = jnp.max(s, axis=-1, keepdims=True)
    p = jnp.exp(s - m)
    l = jnp.sum(p, axis=-1, keepdims=True)
    oh = jnp.einsum("hqk,hkd->hqd",
                    p.astype(_MM_DTYPE), vh.astype(_MM_DTYPE),
                    preferred_element_type=jnp.float32)        # (H, S, Dh)
    oh = oh * pl.reciprocal(l, approx=False)                   # exact recip

    # wo as a head-batched matmul + reduce over heads (no lane reassembly,
    # no VMEM scratch round-trip).
    proj = jnp.einsum("hqd,hdk->hqk",
                      oh.astype(_MM_DTYPE), wo_ref[...],
                      preferred_element_type=jnp.float32)      # (H, S, D)
    x1 = xf + jnp.sum(proj, axis=0)                            # residual in VMEM

    # ---- feed-forward branch: x1 + w2(silu(w1 h) * w3 h), h = rmsnorm(x1) ----
    # (FFN RMSNorm gain is folded into the rows of w13 host-side)
    h2 = x1 * lax.rsqrt(jnp.mean(x1 * x1, axis=-1, keepdims=True) + NORM_EPS)
    h13 = _mm(h2, w13_ref[...])                                # (S, 2*HIDDEN)
    h1 = h13[:, :HIDDEN_DIM]
    h3 = h13[:, HIDDEN_DIM:]
    ff = (h1 * jax.nn.sigmoid(h1)) * h3                        # SiLU(w1 x) * (w3 x)
    o_ref[...] = x1 + _mm(ff, w2_ref[...])


# ------------------------------ host-side prep --------------------------------
def _pair_swap_cols(wt):
    """Swap adjacent output columns: col 2i <-> col 2i+1."""
    din, dout = wt.shape
    return wt.reshape(din, dout // 2, 2)[:, :, ::-1].reshape(din, dout)


def prepare_params(params, freqs_cos, freqs_sin):
    """One-time weight fusion/folding + RoPE table construction (plain JAX)."""
    attn_nw = params["attn_norm_w"].astype(jnp.float32)
    ffn_nw = params["ffn_norm_w"].astype(jnp.float32)

    wq_t, wk_t, wv_t = params["wq_t"], params["wk_t"], params["wv_t"]
    wqkv = jnp.concatenate(
        [wq_t, wk_t, wv_t, _pair_swap_cols(wq_t), _pair_swap_cols(wk_t)], axis=1)
    wqkv = attn_nw[:, None] * wqkv                      # fold attention norm gain
    pad = (-wqkv.shape[1]) % 128                        # lane-dense pad
    if pad:
        wqkv = jnp.concatenate(
            [wqkv, jnp.zeros((wqkv.shape[0], pad), wqkv.dtype)], axis=1)

    w13 = ffn_nw[:, None] * jnp.concatenate(
        [params["w1_t"], params["w3_t"]], axis=1)       # fold FFN norm gain
    wo_h = params["wo_t"].reshape(N_HEADS, HEAD_DIM, DIM)  # head-batched wo

    def rope_tables(n_heads, scale):
        cos2 = jnp.repeat(freqs_cos, 2, axis=-1)        # (S, Dh)
        sin2 = jnp.repeat(freqs_sin, 2, axis=-1)
        sign = jnp.tile(jnp.array([-1.0, 1.0], jnp.float32), (HEAD_DIM // 2,))
        return (scale * jnp.tile(cos2, (1, n_heads)),
                scale * jnp.tile(sin2 * sign[None, :], (1, n_heads)))

    cos_q, sin_q = rope_tables(N_HEADS, _SCALE)         # softmax scale folded in
    cos_k, sin_k = rope_tables(N_KV_HEADS, 1.0)
    return {
        "wqkv_t": wqkv.astype(_MM_DTYPE),
        "wo_h": wo_h.astype(_MM_DTYPE),
        "w13_t": w13.astype(_MM_DTYPE),
        "w2_t": params["w2_t"].astype(_MM_DTYPE),
        "cos_q": cos_q, "sin_q": sin_q, "cos_k": cos_k, "sin_k": sin_k,
    }


def _full(shape):
    nd = len(shape)
    return pl.BlockSpec(shape, lambda b, _n=nd: (0,) * _n)


@jax.jit
def block_forward(prep, x):
    bsz, seq, d = x.shape
    qkv_cols = prep["wqkv_t"].shape[1]
    return pl.pallas_call(
        _block_kernel,
        out_shape=jax.ShapeDtypeStruct((bsz, seq, d), x.dtype),
        grid=(bsz,),
        in_specs=[
            pl.BlockSpec((pl.Squeezed(), seq, d), lambda b: (b, 0, 0)),  # x
            _full((d, qkv_cols)),                      # fused qkv(+swap), bf16
            _full((N_HEADS, HEAD_DIM, d)),             # wo, head-batched, bf16
            _full((d, 2 * HIDDEN_DIM)),                # fused w1|w3, bf16
            _full((HIDDEN_DIM, d)),                    # w2, bf16
            _full((seq, _QW)),                         # cos_q (scale folded)
            _full((seq, _QW)),                         # sin_q (signed, scaled)
            _full((seq, _KW)),                         # cos_k
            _full((seq, _KW)),                         # sin_k (signed)
        ],
        out_specs=pl.BlockSpec((pl.Squeezed(), seq, d), lambda b: (b, 0, 0)),
        compiler_params=pltpu.CompilerParams(
            dimension_semantics=("parallel",)),
    )(x, prep["wqkv_t"], prep["wo_h"], prep["w13_t"], prep["w2_t"],
      prep["cos_q"], prep["sin_q"], prep["cos_k"], prep["sin_k"])


# ---------------------------- pure-JAX reference -------------------------------
def _rope_ref(x, freqs_cos, freqs_sin):
    xr = x.reshape(*x.shape[:-1], -1, 2)
    xc = lax.complex(xr[..., 0], xr[..., 1])
    f = lax.complex(freqs_cos, freqs_sin)[:, None, :]
    out = xc * f
    return jnp.stack([jnp.real(out), jnp.imag(out)], axis=-1).reshape(x.shape)


def reference_block(params, x, freqs_cos, freqs_sin, mask):
    def rms(t, w):
        return t * lax.rsqrt(jnp.mean(t * t, -1, keepdims=True) + NORM_EPS) * w

    bsz, seq, _ = x.shape
    h = rms(x, params["attn_norm_w"])
    xq = (h @ params["wq_t"]).reshape(bsz, seq, N_HEADS, HEAD_DIM)
    xk = (h @ params["wk_t"]).reshape(bsz, seq, N_KV_HEADS, HEAD_DIM)
    xv = (h @ params["wv_t"]).reshape(bsz, seq, N_KV_HEADS, HEAD_DIM)
    xq = _rope_ref(xq, freqs_cos, freqs_sin)
    xk = _rope_ref(xk, freqs_cos, freqs_sin)
    k = jnp.repeat(xk, _REPS, axis=2).transpose(0, 2, 1, 3)
    v = jnp.repeat(xv, _REPS, axis=2).transpose(0, 2, 1, 3)
    q = xq.transpose(0, 2, 1, 3)
    s = jnp.einsum("bhqd,bhkd->bhqk", q, k) * _SCALE + mask
    p = jax.nn.softmax(s, axis=-1)
    o = jnp.einsum("bhqk,bhkd->bhqd", p, v)
    o = o.transpose(0, 2, 1, 3).reshape(bsz, seq, _QW)
    x1 = x + o @ params["wo_t"]
    h2 = rms(x1, params["ffn_norm_w"])
    h1 = h2 @ params["w1_t"]
    ff = (h1 * jax.nn.sigmoid(h1)) * (h2 @ params["w3_t"])
    return x1 + ff @ params["w2_t"]


# ----------------------------------- main --------------------------------------
if __name__ == "__main__":
    keys = jax.random.split(jax.random.PRNGKey(0), 10)
    params = {
        "wq_t": 0.05 * jax.random.normal(keys[0], (DIM, _QW), jnp.float32),
        "wk_t": 0.05 * jax.random.normal(keys[1], (DIM, _KW), jnp.float32),
        "wv_t": 0.05 * jax.random.normal(keys[2], (DIM, _KW), jnp.float32),
        "wo_t": 0.05 * jax.random.normal(keys[3], (_QW, DIM), jnp.float32),
        "w1_t": 0.05 * jax.random.normal(keys[4], (DIM, HIDDEN_DIM), jnp.float32),
        "w2_t": 0.05 * jax.random.normal(keys[5], (HIDDEN_DIM, DIM), jnp.float32),
        "w3_t": 0.05 * jax.random.normal(keys[6], (DIM, HIDDEN_DIM), jnp.float32),
        "attn_norm_w": 1.0 + 0.1 * jax.random.normal(keys[7], (DIM,), jnp.float32),
        "ffn_norm_w": 1.0 + 0.1 * jax.random.normal(keys[8], (DIM,), jnp.float32),
    }
    x = jax.random.normal(keys[9], (B, S, DIM), jnp.float32)

    positions = jnp.arange(S)                                    # prefill path
    inv_freq = 1.0 / (10000.0 ** (jnp.arange(0, HEAD_DIM, 2, dtype=jnp.float32)
                                  / HEAD_DIM))
    angles = positions.astype(jnp.float32)[:, None] * inv_freq[None, :]
    freqs_cos, freqs_sin = jnp.cos(angles), jnp.sin(angles)

    prep = prepare_params(params, freqs_cos, freqs_sin)
    out = jax.block_until_ready(block_forward(prep, x))

    row, col = jnp.arange(S)[:, None], jnp.arange(S)[None, :]
    mask = jnp.where(col <= row, 0.0, -1e9).astype(jnp.float32)  # for reference
    ref = reference_block(params, x, freqs_cos, freqs_sin, mask)
    assert out.shape == (B, S, DIM)
    # bf16 MXU inputs vs f32 reference -> slightly looser tolerance.
    np.testing.assert_allclose(np.asarray(out), np.asarray(ref),
                               atol=2e-2, rtol=2e-2)
    print("KERNEL_OK")
</pallas_src>

<mosaic_0001>
module attributes {stable_mosaic.version = 11 : i64} {
  func.func @_block_kernel(%arg0: i32, %arg1: memref<1x8x32xf32, #tpu.memory_space<vmem>>, %arg2: memref<32x128xbf16, #tpu.memory_space<vmem>>, %arg3: memref<4x8x32xbf16, #tpu.memory_space<vmem>>, %arg4: memref<32x128xbf16, #tpu.memory_space<vmem>>, %arg5: memref<64x32xbf16, #tpu.memory_space<vmem>>, %arg6: memref<8x32xf32, #tpu.memory_space<vmem>>, %arg7: memref<8x32xf32, #tpu.memory_space<vmem>>, %arg8: memref<8x16xf32, #tpu.memory_space<vmem>>, %arg9: memref<8x16xf32, #tpu.memory_space<vmem>>, %arg10: memref<1x8x32xf32, #tpu.memory_space<vmem>>) attributes {dimension_semantics = [#tpu.dimension_semantics<parallel>], iteration_bounds = array<i64: 2>, scalar_prefetch = 0 : i64, scratch_operands = 0 : i64, tpu.core_type = #tpu.core_type<tc>, window_params = [{transform_indices = @transform_0, window_bounds = array<i64: 1, 8, 32>}, {pipeline_mode = #tpu.pipeline_mode<synchronous>, transform_indices = @transform_1, window_bounds = array<i64: 32, 128>}, {pipeline_mode = #tpu.pipeline_mode<synchronous>, transform_indices = @transform_2, window_bounds = array<i64: 4, 8, 32>}, {pipeline_mode = #tpu.pipeline_mode<synchronous>, transform_indices = @transform_3, window_bounds = array<i64: 32, 128>}, {pipeline_mode = #tpu.pipeline_mode<synchronous>, transform_indices = @transform_4, window_bounds = array<i64: 64, 32>}, {pipeline_mode = #tpu.pipeline_mode<synchronous>, transform_indices = @transform_5, window_bounds = array<i64: 8, 32>}, {pipeline_mode = #tpu.pipeline_mode<synchronous>, transform_indices = @transform_6, window_bounds = array<i64: 8, 32>}, {pipeline_mode = #tpu.pipeline_mode<synchronous>, transform_indices = @transform_7, window_bounds = array<i64: 8, 16>}, {pipeline_mode = #tpu.pipeline_mode<synchronous>, transform_indices = @transform_8, window_bounds = array<i64: 8, 16>}, {transform_indices = @transform_9, window_bounds = array<i64: 1, 8, 32>}]} {
    %c0 = arith.constant 0 : index
    %c0_0 = arith.constant 0 : index
    %c0_1 = arith.constant 0 : index
    %0 = vector.load %arg1[%c0, %c0_0, %c0_1] : memref<1x8x32xf32, #tpu.memory_space<vmem>>, vector<1x8x32xf32>
    %1 = vector.shape_cast %0 : vector<1x8x32xf32> to vector<8x32xf32>
    %2 = arith.mulf %1, %1 : vector<8x32xf32>
    %cst = arith.constant dense<0.000000e+00> : vector<8xf32>
    %3 = vector.multi_reduction <add>, %2, %cst [1] : vector<8x32xf32> to vector<8xf32>
    %4 = vector.shape_cast %3 : vector<8xf32> to vector<8x1xf32>
    %cst_2 = arith.constant 3.200000e+01 : f32
    %5 = vector.broadcast %cst_2 : f32 to vector<8x1xf32>
    %6 = arith.divf %4, %5 : vector<8x1xf32>
    %cst_3 = arith.constant 9.99999974E-6 : f32
    %7 = vector.broadcast %cst_3 : f32 to vector<8x1xf32>
    %8 = arith.addf %6, %7 : vector<8x1xf32>
    %9 = math.rsqrt %8 : vector<8x1xf32>
    %10 = vector.broadcast %9 : vector<8x1xf32> to vector<8x32xf32>
    %11 = arith.mulf %1, %10 : vector<8x32xf32>
    %c0_4 = arith.constant 0 : index
    %c0_5 = arith.constant 0 : index
    %12 = vector.load %arg2[%c0_4, %c0_5] : memref<32x128xbf16, #tpu.memory_space<vmem>>, vector<32x128xbf16>
    %13 = arith.truncf %11 : vector<8x32xf32> to vector<8x32xbf16>
    %cst_6 = arith.constant dense<0.000000e+00> : vector<8x128xf32>
    %14 = tpu.matmul %13, %12, %cst_6 {dimension_numbers = #tpu.dot_dimension_numbers<[1], [0], [0], [1], [0, 0, 1, 1], [], []>} : vector<8x32xbf16>, vector<32x128xbf16>, vector<8x128xf32> -> vector<8x128xf32>
    %15 = vector.extract_strided_slice %14 {offsets = [0, 0], sizes = [8, 32], strides = [1, 1]} : vector<8x128xf32> to vector<8x32xf32>
    %16 = vector.extract_strided_slice %14 {offsets = [0, 32], sizes = [8, 16], strides = [1, 1]} : vector<8x128xf32> to vector<8x16xf32>
    %17 = vector.extract_strided_slice %14 {offsets = [0, 48], sizes = [8, 16], strides = [1, 1]} : vector<8x128xf32> to vector<8x16xf32>
    %18 = vector.extract_strided_slice %14 {offsets = [0, 64], sizes = [8, 32], strides = [1, 1]} : vector<8x128xf32> to vector<8x32xf32>
    %19 = vector.extract_strided_slice %14 {offsets = [0, 96], sizes = [8, 16], strides = [1, 1]} : vector<8x128xf32> to vector<8x16xf32>
    %c0_7 = arith.constant 0 : index
    %c0_8 = arith.constant 0 : index
    %20 = vector.load %arg6[%c0_7, %c0_8] : memref<8x32xf32, #tpu.memory_space<vmem>>, vector<8x32xf32>
    %21 = arith.mulf %15, %20 : vector<8x32xf32>
    %c0_9 = arith.constant 0 : index
    %c0_10 = arith.constant 0 : index
    %22 = vector.load %arg7[%c0_9, %c0_10] : memref<8x32xf32, #tpu.memory_space<vmem>>, vector<8x32xf32>
    %23 = arith.mulf %18, %22 : vector<8x32xf32>
    %24 = arith.addf %21, %23 : vector<8x32xf32>
    %c0_11 = arith.constant 0 : index
    %c0_12 = arith.constant 0 : index
    %25 = vector.load %arg8[%c0_11, %c0_12] : memref<8x16xf32, #tpu.memory_space<vmem>>, vector<8x16xf32>
    %26 = arith.mulf %16, %25 : vector<8x16xf32>
    %c0_13 = arith.constant 0 : index
    %c0_14 = arith.constant 0 : index
    %27 = vector.load %arg9[%c0_13, %c0_14] : memref<8x16xf32, #tpu.memory_space<vmem>>, vector<8x16xf32>
    %28 = arith.mulf %19, %27 : vector<8x16xf32>
    %29 = arith.addf %26, %28 : vector<8x16xf32>
    %30 = vector.extract_strided_slice %24 {offsets = [0, 0], sizes = [8, 8], strides = [1, 1]} : vector<8x32xf32> to vector<8x8xf32>
    %31 = vector.extract_strided_slice %24 {offsets = [0, 8], sizes = [8, 8], strides = [1, 1]} : vector<8x32xf32> to vector<8x8xf32>
    %32 = vector.extract_strided_slice %24 {offsets = [0, 16], sizes = [8, 8], strides = [1, 1]} : vector<8x32xf32> to vector<8x8xf32>
    %33 = vector.extract_strided_slice %24 {offsets = [0, 24], sizes = [8, 8], strides = [1, 1]} : vector<8x32xf32> to vector<8x8xf32>
    %34 = vector.extract_strided_slice %29 {offsets = [0, 0], sizes = [8, 8], strides = [1, 1]} : vector<8x16xf32> to vector<8x8xf32>
    %35 = vector.extract_strided_slice %29 {offsets = [0, 8], sizes = [8, 8], strides = [1, 1]} : vector<8x16xf32> to vector<8x8xf32>
    %36 = vector.extract_strided_slice %17 {offsets = [0, 0], sizes = [8, 8], strides = [1, 1]} : vector<8x16xf32> to vector<8x8xf32>
    %37 = vector.extract_strided_slice %17 {offsets = [0, 8], sizes = [8, 8], strides = [1, 1]} : vector<8x16xf32> to vector<8x8xf32>
    %38 = vector.shape_cast %30 : vector<8x8xf32> to vector<1x8x8xf32>
    %39 = vector.shape_cast %31 : vector<8x8xf32> to vector<1x8x8xf32>
    %40 = vector.shape_cast %32 : vector<8x8xf32> to vector<1x8x8xf32>
    %41 = vector.shape_cast %33 : vector<8x8xf32> to vector<1x8x8xf32>
    %42 = tpu.concatenate %38, %39, %40, %41 in 0 : vector<1x8x8xf32>, vector<1x8x8xf32>, vector<1x8x8xf32>, vector<1x8x8xf32> -> vector<4x8x8xf32>
    %43 = vector.shape_cast %34 : vector<8x8xf32> to vector<1x8x8xf32>
    %44 = vector.shape_cast %34 : vector<8x8xf32> to vector<1x8x8xf32>
    %45 = vector.shape_cast %35 : vector<8x8xf32> to vector<1x8x8xf32>
    %46 = vector.shape_cast %35 : vector<8x8xf32> to vector<1x8x8xf32>
    %47 = tpu.concatenate %43, %44, %45, %46 in 0 : vector<1x8x8xf32>, vector<1x8x8xf32>, vector<1x8x8xf32>, vector<1x8x8xf32> -> vector<4x8x8xf32>
    %48 = vector.shape_cast %36 : vector<8x8xf32> to vector<1x8x8xf32>
    %49 = vector.shape_cast %36 : vector<8x8xf32> to vector<1x8x8xf32>
    %50 = vector.shape_cast %37 : vector<8x8xf32> to vector<1x8x8xf32>
    %51 = vector.shape_cast %37 : vector<8x8xf32> to vector<1x8x8xf32>
    %52 = tpu.concatenate %48, %49, %50, %51 in 0 : vector<1x8x8xf32>, vector<1x8x8xf32>, vector<1x8x8xf32>, vector<1x8x8xf32> -> vector<4x8x8xf32>
    %53 = tpu.iota {dimensions = array<i32: 0>} : vector<8x8xi32>
    %54 = tpu.iota {dimensions = array<i32: 1>} : vector<8x8xi32>
    %55 = arith.cmpi sle, %54, %53 : vector<8x8xi32>
    %cst_15 = arith.constant 0.000000e+00 : f32
    %cst_16 = arith.constant -1.000000e+09 : f32
    %56 = vector.broadcast %cst_15 : f32 to vector<8x8xf32>
    %57 = vector.broadcast %cst_16 : f32 to vector<8x8xf32>
    %58 = arith.select %55, %56, %57 : vector<8x8xi1>, vector<8x8xf32>
    %59 = arith.truncf %42 : vector<4x8x8xf32> to vector<4x8x8xbf16>
    %60 = arith.truncf %47 : vector<4x8x8xf32> to vector<4x8x8xbf16>
    "tpu.trace_start"() <{level = 10 : i32, message = "hqd,hkd->hqk"}> : () -> ()
    %cst_17 = arith.constant dense<0.000000e+00> : vector<4x8x8xf32>
    %61 = tpu.matmul %59, %60, %cst_17 {dimension_numbers = #tpu.dot_dimension_numbers<[2], [2], [1], [1], [0, 0, 0, 1, 1, 1], [0], [0]>} : vector<4x8x8xbf16>, vector<4x8x8xbf16>, vector<4x8x8xf32> -> vector<4x8x8xf32>
    "tpu.trace_stop"() : () -> ()
    %62 = vector.shape_cast %58 : vector<8x8xf32> to vector<1x8x8xf32>
    %63 = vector.broadcast %62 : vector<1x8x8xf32> to vector<4x8x8xf32>
    %64 = arith.addf %61, %63 : vector<4x8x8xf32>
    %cst_18 = arith.constant dense<0xFF800000> : vector<4x8xf32>
    %65 = vector.multi_reduction <maximumf>, %64, %cst_18 [2] : vector<4x8x8xf32> to vector<4x8xf32>
    %66 = vector.shape_cast %65 : vector<4x8xf32> to vector<4x8x1xf32>
    %67 = vector.broadcast %66 : vector<4x8x1xf32> to vector<4x8x8xf32>
    %68 = arith.subf %64, %67 : vector<4x8x8xf32>
    %69 = math.exp %68 : vector<4x8x8xf32>
    %cst_19 = arith.constant dense<0.000000e+00> : vector<4x8xf32>
    %70 = vector.multi_reduction <add>, %69, %cst_19 [2] : vector<4x8x8xf32> to vector<4x8xf32>
    %71 = vector.shape_cast %70 : vector<4x8xf32> to vector<4x8x1xf32>
    %72 = arith.truncf %69 : vector<4x8x8xf32> to vector<4x8x8xbf16>
    %73 = arith.truncf %52 : vector<4x8x8xf32> to vector<4x8x8xbf16>
    "tpu.trace_start"() <{level = 10 : i32, message = "hqk,hkd->hqd"}> : () -> ()
    %cst_20 = arith.constant dense<0.000000e+00> : vector<4x8x8xf32>
    %74 = tpu.matmul %72, %73, %cst_20 {dimension_numbers = #tpu.dot_dimension_numbers<[2], [1], [1], [2], [0, 0, 0, 1, 1, 2], [0], [0]>} : vector<4x8x8xbf16>, vector<4x8x8xbf16>, vector<4x8x8xf32> -> vector<4x8x8xf32>
    "tpu.trace_stop"() : () -> ()
    %75 = tpu.reciprocal %71 : vector<4x8x1xf32> -> vector<4x8x1xf32>
    %76 = vector.broadcast %75 : vector<4x8x1xf32> to vector<4x8x8xf32>
    %77 = arith.mulf %74, %76 : vector<4x8x8xf32>
    %78 = arith.truncf %77 : vector<4x8x8xf32> to vector<4x8x8xbf16>
    %c0_21 = arith.constant 0 : index
    %c0_22 = arith.constant 0 : index
    %c0_23 = arith.constant 0 : index
    %79 = vector.load %arg3[%c0_21, %c0_22, %c0_23] : memref<4x8x32xbf16, #tpu.memory_space<vmem>>, vector<4x8x32xbf16>
    "tpu.trace_start"() <{level = 10 : i32, message = "hqd,hdk->hqk"}> : () -> ()
    %cst_24 = arith.constant dense<0.000000e+00> : vector<4x8x32xf32>
    %80 = tpu.matmul %78, %79, %cst_24 {dimension_numbers = #tpu.dot_dimension_numbers<[2], [1], [1], [2], [0, 0, 0, 1, 1, 2], [0], [0]>} : vector<4x8x8xbf16>, vector<4x8x32xbf16>, vector<4x8x32xf32> -> vector<4x8x32xf32>
    "tpu.trace_stop"() : () -> ()
    %cst_25 = arith.constant dense<0.000000e+00> : vector<8x32xf32>
    %81 = vector.multi_reduction <add>, %80, %cst_25 [0] : vector<4x8x32xf32> to vector<8x32xf32>
    %82 = arith.addf %1, %81 : vector<8x32xf32>
    %83 = arith.mulf %82, %82 : vector<8x32xf32>
    %cst_26 = arith.constant dense<0.000000e+00> : vector<8xf32>
    %84 = vector.multi_reduction <add>, %83, %cst_26 [1] : vector<8x32xf32> to vector<8xf32>
    %85 = vector.shape_cast %84 : vector<8xf32> to vector<8x1xf32>
    %cst_27 = arith.constant 3.200000e+01 : f32
    %86 = vector.broadcast %cst_27 : f32 to vector<8x1xf32>
    %87 = arith.divf %85, %86 : vector<8x1xf32>
    %cst_28 = arith.constant 9.99999974E-6 : f32
    %88 = vector.broadcast %cst_28 : f32 to vector<8x1xf32>
    %89 = arith.addf %87, %88 : vector<8x1xf32>
    %90 = math.rsqrt %89 : vector<8x1xf32>
    %91 = vector.broadcast %90 : vector<8x1xf32> to vector<8x32xf32>
    %92 = arith.mulf %82, %91 : vector<8x32xf32>
    %c0_29 = arith.constant 0 : index
    %c0_30 = arith.constant 0 : index
    %93 = vector.load %arg4[%c0_29, %c0_30] : memref<32x128xbf16, #tpu.memory_space<vmem>>, vector<32x128xbf16>
    %94 = arith.truncf %92 : vector<8x32xf32> to vector<8x32xbf16>
    %cst_31 = arith.constant dense<0.000000e+00> : vector<8x128xf32>
    %95 = tpu.matmul %94, %93, %cst_31 {dimension_numbers = #tpu.dot_dimension_numbers<[1], [0], [0], [1], [0, 0, 1, 1], [], []>} : vector<8x32xbf16>, vector<32x128xbf16>, vector<8x128xf32> -> vector<8x128xf32>
    %96 = vector.extract_strided_slice %95 {offsets = [0, 0], sizes = [8, 64], strides = [1, 1]} : vector<8x128xf32> to vector<8x64xf32>
    %97 = vector.extract_strided_slice %95 {offsets = [0, 64], sizes = [8, 64], strides = [1, 1]} : vector<8x128xf32> to vector<8x64xf32>
    %98 = arith.negf %96 : vector<8x64xf32>
    %99 = math.exp %98 : vector<8x64xf32>
    %cst_32 = arith.constant 1.000000e+00 : f32
    %100 = vector.broadcast %cst_32 : f32 to vector<8x64xf32>
    %101 = arith.addf %100, %99 : vector<8x64xf32>
    %102 = arith.divf %100, %101 : vector<8x64xf32>
    %103 = arith.mulf %96, %102 : vector<8x64xf32>
    %104 = arith.mulf %103, %97 : vector<8x64xf32>
    %c0_33 = arith.constant 0 : index
    %c0_34 = arith.constant 0 : index
    %105 = vector.load %arg5[%c0_33, %c0_34] : memref<64x32xbf16, #tpu.memory_space<vmem>>, vector<64x32xbf16>
    %106 = arith.truncf %104 : vector<8x64xf32> to vector<8x64xbf16>
    %cst_35 = arith.constant dense<0.000000e+00> : vector<8x32xf32>
    %107 = tpu.matmul %106, %105, %cst_35 {dimension_numbers = #tpu.dot_dimension_numbers<[1], [0], [0], [1], [0, 0, 1, 1], [], []>} : vector<8x64xbf16>, vector<64x32xbf16>, vector<8x32xf32> -> vector<8x32xf32>
    %108 = arith.addf %82, %107 : vector<8x32xf32>
    %c0_36 = arith.constant 0 : index
    %c0_37 = arith.constant 0 : index
    %c0_38 = arith.constant 0 : index
    %109 = vector.load %arg10[%c0_36, %c0_37, %c0_38] : memref<1x8x32xf32, #tpu.memory_space<vmem>>, vector<1x8x32xf32>
    %110 = vector.shape_cast %109 : vector<1x8x32xf32> to vector<8x32xf32>
    %111 = vector.shape_cast %108 : vector<8x32xf32> to vector<1x8x32xf32>
    tpu.vector_store %arg10[%c0_36, %c0_37, %c0_38], %111 {strides = array<i32>} : memref<1x8x32xf32, #tpu.memory_space<vmem>>, vector<1x8x32xf32>,
    return
  }
  func.func @transform_0(%arg0: i32) -> (i32, i32, i32) {
    %c0_i32 = arith.constant 0 : i32
    %c0_i32_0 = arith.constant 0 : i32
    %c0_i32_1 = arith.constant 0 : i32
    return %arg0, %c0_i32, %c0_i32_0 : i32, i32, i32
  }
  func.func @transform_1(%arg0: i32) -> (i32, i32) {
    %c0_i32 = arith.constant 0 : i32
    %c0_i32_0 = arith.constant 0 : i32
    %c0_i32_1 = arith.constant 0 : i32
    return %c0_i32, %c0_i32_0 : i32, i32
  }
  func.func @transform_2(%arg0: i32) -> (i32, i32, i32) {
    %c0_i32 = arith.constant 0 : i32
    %c0_i32_0 = arith.constant 0 : i32
    %c0_i32_1 = arith.constant 0 : i32
    %c0_i32_2 = arith.constant 0 : i32
    return %c0_i32, %c0_i32_0, %c0_i32_1 : i32, i32, i32
  }
  func.func @transform_3(%arg0: i32) -> (i32, i32) {
    %c0_i32 = arith.constant 0 : i32
    %c0_i32_0 = arith.constant 0 : i32
    %c0_i32_1 = arith.constant 0 : i32
    return %c0_i32, %c0_i32_0 : i32, i32
  }
  func.func @transform_4(%arg0: i32) -> (i32, i32) {
    %c0_i32 = arith.constant 0 : i32
    %c0_i32_0 = arith.constant 0 : i32
    %c0_i32_1 = arith.constant 0 : i32
    return %c0_i32, %c0_i32_0 : i32, i32
  }
  func.func @transform_5(%arg0: i32) -> (i32, i32) {
    %c0_i32 = arith.constant 0 : i32
    %c0_i32_0 = arith.constant 0 : i32
    %c0_i32_1 = arith.constant 0 : i32
    return %c0_i32, %c0_i32_0 : i32, i32
  }
  func.func @transform_6(%arg0: i32) -> (i32, i32) {
    %c0_i32 = arith.constant 0 : i32
    %c0_i32_0 = arith.constant 0 : i32
    %c0_i32_1 = arith.constant 0 : i32
    return %c0_i32, %c0_i32_0 : i32, i32
  }
  func.func @transform_7(%arg0: i32) -> (i32, i32) {
    %c0_i32 = arith.constant 0 : i32
    %c0_i32_0 = arith.constant 0 : i32
    %c0_i32_1 = arith.constant 0 : i32
    return %c0_i32, %c0_i32_0 : i32, i32
  }
  func.func @transform_8(%arg0: i32) -> (i32, i32) {
    %c0_i32 = arith.constant 0 : i32
    %c0_i32_0 = arith.constant 0 : i32
    %c0_i32_1 = arith.constant 0 : i32
    return %c0_i32, %c0_i32_0 : i32, i32
  }
  func.func @transform_9(%arg0: i32) -> (i32, i32, i32) {
    %c0_i32 = arith.constant 0 : i32
    %c0_i32_0 = arith.constant 0 : i32
    %c0_i32_1 = arith.constant 0 : i32
    return %arg0, %c0_i32, %c0_i32_0 : i32, i32, i32
  }
}

</mosaic_0001>

<bundles_post_ra>
// kernel: block_forward.1
= control target key start
LH: loop header
LB: loop body
LE: loop exit
PB: predicated region body
PF: predicated region fallthrough
CT: control target
= control target key end

     0   :  { %s2400_s0 = inlined_call_operand.vmem [shape: f32[2,8,32], index: 0, kind: input, shape index: {}]   ;;  %s2401_s1 = inlined_call_operand.vmem [shape: bf16[32,128], index: 1, kind: input, shape index: {}]   ;;  %s2402_s2 = inlined_call_operand.vmem [shape: bf16[4,8,32], index: 2, kind: input, shape index: {}]   ;;  %s2403_s3 = inlined_call_operand.hbm [shape: bf16[32,128], index: 3, kind: input, shape index: {}]   ;;  %s2404_s4 = inlined_call_operand.vmem [shape: bf16[64,32], index: 4, kind: input, shape index: {}]   ;;  %s2405_s5 = inlined_call_operand.hbm [shape: f32[8,32], index: 5, kind: input, shape index: {}]   ;;  %s2406_s6 = inlined_call_operand.hbm [shape: f32[8,32], index: 6, kind: input, shape index: {}]   ;;  %s2407_s7 = inlined_call_operand.hbm [shape: f32[8,16], index: 7, kind: input, shape index: {}]   ;;  %s2408_s8 = inlined_call_operand.hbm [shape: f32[8,16], index: 8, kind: input, shape index: {}]   ;;  %s2409_s9 = inlined_call_operand.hbm [shape: f32[2,8,32], index: 9, kind: output, shape index: {}]  }
   0x1   :  { %2418 = sst [smem:[#allocation21_spill]] %s2405_s5 }
   0x2   :  { %2419 = sst [smem:[#allocation22_spill]] %s2407_s7 }
   0x3   :  { %14 = vsyncpa [#allocation3], 0 }
   0x4   :  { %15 = vsyncpa [#allocation6], 0 }
   0x5   :  { %16 = vsyncpa [#allocation9], 0 }
   0x6   :  { %17 = vsyncpa [#allocation4], 0 }
   0x7   :  { %19 = vsyncpa [#allocation4 + $0x1], 0  ;;  %s2024_s30 = smov 0   ;;  %s2026_s10 = smov 0  }
   0x8   :  { %s2028_s11 = smov 0   ;;  %s2030_s12 = smov 0  }
   0x9 LB: > { %2420 = sst [smem:[#allocation16_spill]] %s1942_s30  ;;  %s2045_s13 = sadd.s32 4294967295, %s1954_s12   ;;  %s1954_s12 = sphi %s2030_s12, %s2443_s12   ;;  %s1950_s11 = sphi %s2028_s11, %s2445_s11   ;;  %s1946_s10 = sphi %s2026_s10, %s2447_s10   ;;  %s1942_s30 = sphi %s2024_s30, %s2446_s30  }
   0xa   : > { %2421 = sst [smem:[#allocation17_spill]] %s1950_s11  ;;  %s1427_s14 = sadd.s32 4294967294, %s1954_s12  }
   0xb   : > { %s2049_s15 = sadd.s32 1, %s1954_s12   ;;  %s226_s16 = sadd.s32 1, %s1950_s11 }
   0xc   : > { %2422 = sst [smem:[#allocation18_spill]] %s2049_s15  ;;  %s223_s17 = ssub.s32 %s1954_s12, %s2049_s15 }
   0xd   : > { %p236_p0 = scmp.ne.s32.totalorder %s1950_s11, %s1946_s10  ;;  %p224_p1 = scmp.eq.s32.totalorder %s223_s17, 0 }
   0xe   : > { %p237_p2 = scmp.eq.s32.totalorder %s2045_s13, 1  ;;  %p242_p3 = scmp.ne.s32.totalorder %s1946_s10, %s1942_s30 }
   0xf   : > { %p243_p4 = scmp.eq.s32.totalorder %s1427_s14, 1  ;;  %p1428_p7 = scmp.ge.s32.totalorder %s1954_s12, 1 }
  0x10   : > { %s2060_s18 = scalar_select %p224_p1, %s1950_s11, %s226_s16  }
  0x11   : > { %p2062_p5 = por %p237_p2, %p236_p0  ;;  %p2066_p6 = por %p243_p4, %p242_p3 }
  0x12   : > { %2423 = sst [smem:[#allocation19_spill]] %s2060_s18  ;;  %p250_p8 = scmp.lt.s32.totalorder %s1954_s12, 3 }
  0x13   : > { %s2424_s19 = scalar_select %p2062_p5, 1, 0 }
  0x14   : > { %s2425_s20 = scalar_select %p2066_p6, 1, 0 }
  0x15   : > { %p2410_p9 = scmp.eq.s32.totalorder %s2045_s13, 0  ;;  %p2073_p10 = pnand %p1428_p7, %p250_p8 }
  0x16   : > { %2426 = sst [smem:[#allocation20_spill]] %s2425_s20  ;;  %s1956_s22 = smov [#allocation5]  }
  0x17   : > { %s2427_s21 = scalar_select %p2073_p10, 1, 0 }
  0x18   : > { %s285_s23 = sshll.u32 %s1956_s22, 4  ;;  %p1628_p11 = pneg %p2073_p10  ;;  %s286_s23 = int_to_ptr.vmem [resolvable:$true] %s285_s23 }
  0x19   : > { %s1957_s24 = smov [#allocation8]   ;;  %s1958_s27 = smov [#allocation2]  }
  0x1a   : > { %s307_s25 = sshll.u32 %s1957_s24, 4  ;;  %p2081_p12 = pnand %p2410_p9, %p1628_p11  ;;  %s2085_s25 = int_to_ptr.vmem [resolvable:$true] %s307_s25 }
  0x1b   : > { %s268_s28 = sshll.u32 %s1958_s27, 4  ;;  %s2429_s5 = sld [smem:[#allocation21_spill]]  ;;  %s2087_s28 = int_to_ptr.vmem [resolvable:$true] %s268_s28 }
  0x1c   : > { %p2097_p0 = pneg %p2081_p12 }
  0x21   : > { %s1740_s16 = scalar_lea.hbm %s2429_s5, 128 }
  0x22   : > { %p1741_p13 = scmp.ne.s32.totalorder %s2429_s5, %s1740_s16  ;;  %p1747_p3 = scmp.lt.u32.totalorder %s1740_s16, %s2429_s5 }
  0x24   : > { %p1743_p1 = pnand %p2097_p0, %p1741_p13 }
  0x26   : > { %p1744_p2 = pneg %p1743_p1 }
  0x28   : > { %p1749_p4 = pnand %p1747_p3, %p1744_p2 }
  0x2a   : > { %1752 = shalt.err (!%p1749_p4)
}
  0x2b   : > { %s1753_s29 = scalar_lea.vmem %s286_s23, 128  ;;  %p1761_p9 = scmp.lt.s32.totalorder %s286_s23, %s286_s23 }
  0x2c   : > { %p1754_p7 = scmp.ne.s32.totalorder %s286_s23, %s1753_s29  ;;  %p1762_p6 = scmp.lt.s32.totalorder %s1753_s29, %s1753_s29 }
  0x2e   : > { %p1756_p8 = pnand %p1754_p7, %p2097_p0  ;;  %p1763_p5 = por %p1762_p6, %p1761_p9 }
  0x30   : > { %p1757_p11 = pneg %p1756_p8 }
  0x32   : > { %p1764_p10 = pnand %p1763_p5, %p1757_p11 }
  0x34   : > { %1767 = shalt.err (!%p1764_p10)
}
  0x35   : > { %1634 = dma.hbm_to_vmem [thread:$0]  (!%p2081_p12), %s2429_s5, 128, %s286_s23, [#allocation6]  }
  0x36   : > { %s2431_s7 = sld [smem:[#allocation22_spill]] }
  0x3c   : > { %s1768_s22 = scalar_lea.hbm %s2431_s7, 128 }
  0x3d   : > { %p1769_p13 = scmp.ne.s32.totalorder %s2431_s7, %s1768_s22  ;;  %p1775_p5 = scmp.lt.u32.totalorder %s1768_s22, %s2431_s7 }
  0x3f   : > { %p1771_p1 = pnand %p1769_p13, %p2097_p0 }
  0x41   : > { %p1772_p6 = pneg %p1771_p1 }
  0x43   : > { %p1777_p9 = pnand %p1775_p5, %p1772_p6 }
  0x45   : > { %1780 = shalt.err (!%p1777_p9)
}
  0x46   : > { %s1781_s23 = scalar_lea.vmem %s2085_s25, 128  ;;  %p1789_p4 = scmp.lt.s32.totalorder %s2085_s25, %s2085_s25 }
  0x47   : > { %p1782_p10 = scmp.ne.s32.totalorder %s2085_s25, %s1781_s23  ;;  %p1790_p7 = scmp.lt.s32.totalorder %s1781_s23, %s1781_s23 }
  0x49   : > { %p1784_p2 = pnand %p1782_p10, %p2097_p0  ;;  %p1791_p8 = por %p1790_p7, %p1789_p4 }
  0x4b   : > { %p1785_p3 = pneg %p1784_p2 }
  0x4d   : > { %p1792_p11 = pnand %p1791_p8, %p1785_p3 }
  0x4f   : > { %1795 = shalt.err (!%p1792_p11)
}
  0x50   : > { %1640 = dma.hbm_to_vmem [thread:$0]  (!%p2081_p12), %s2431_s7, 128, %s2085_s25, [#allocation9]  }
  0x51   : > { %s1796_s18 = scalar_lea.hbm %s2403_s3, 256 }
  0x52   : > { %p1797_p13 = scmp.ne.s32.totalorder %s2403_s3, %s1796_s18  ;;  %p1803_p5 = scmp.lt.u32.totalorder %s1796_s18, %s2403_s3 }
  0x54   : > { %p1799_p1 = pnand %p1797_p13, %p2097_p0 }
  0x56   : > { %p1800_p6 = pneg %p1799_p1 }
  0x58   : > { %p1805_p9 = pnand %p1803_p5, %p1800_p6 }
  0x5a   : > { %1808 = shalt.err (!%p1805_p9)
}
  0x5b   : > { %s1809_s25 = scalar_lea.vmem %s2087_s28, 256  ;;  %p1817_p4 = scmp.lt.s32.totalorder %s2087_s28, %s2087_s28 }
  0x5c   : > { %p1810_p10 = scmp.ne.s32.totalorder %s2087_s28, %s1809_s25  ;;  %p1818_p7 = scmp.lt.s32.totalorder %s1809_s25, %s1809_s25 }
  0x5e   : > { %p1812_p2 = pnand %p1810_p10, %p2097_p0  ;;  %p1819_p8 = por %p1818_p7, %p1817_p4 }
  0x60   : > { %p1813_p3 = pneg %p1812_p2 }
  0x62   : > { %p1820_p11 = pnand %p1819_p8, %p1813_p3 }
  0x64   : > { %1823 = shalt.err (!%p1820_p11)
}
  0x65   : > { %s1959_s23 = smov 64   ;;  %s1960_s11 = smov 4  }
  0x66   : > { %1631 = dma.hbm_to_vmem [thread:$0]  (!%p2081_p12), %s2403_s3, 256, %s2087_s28, [#allocation3], %s1959_s23, %s1959_s23, %s1960_s11  }
  0x67   : > { %s1961_s17 = smov [#allocation7]   ;;  %s1962_s16 = smov [#allocation10]  }
  0x68   : > { %s296_s18 = sshll.u32 %s1961_s17, 4  ;;  %s318_s22 = sshll.u32 %s1962_s16, 4  ;;  %s297_s18 = int_to_ptr.vmem [resolvable:$true] %s296_s18  ;;  %s319_s22 = int_to_ptr.vmem [resolvable:$true] %s318_s22 }
  0x69   : > { %s1824_s25 = scalar_lea.hbm %s2406_s6, 128 }
  0x6a   : > { %p1825_p13 = scmp.ne.s32.totalorder %s2406_s6, %s1824_s25  ;;  %p1831_p5 = scmp.lt.u32.totalorder %s1824_s25, %s2406_s6 }
  0x6c   : > { %p1827_p1 = pnand %p1825_p13, %p2097_p0 }
  0x6e   : > { %p1828_p6 = pneg %p1827_p1 }
  0x70   : > { %p1833_p9 = pnand %p1831_p5, %p1828_p6 }
  0x72   : > { %1836 = shalt.err (!%p1833_p9)
}
  0x73   : > { %s1837_s28 = scalar_lea.vmem %s297_s18, 128  ;;  %p1845_p4 = scmp.lt.s32.totalorder %s297_s18, %s297_s18 }
  0x74   : > { %p1838_p10 = scmp.ne.s32.totalorder %s297_s18, %s1837_s28  ;;  %p1846_p7 = scmp.lt.s32.totalorder %s1837_s28, %s1837_s28 }
  0x76   : > { %p1840_p2 = pnand %p1838_p10, %p2097_p0  ;;  %p1847_p8 = por %p1846_p7, %p1845_p4 }
  0x78   : > { %p1841_p3 = pneg %p1840_p2 }
  0x7a   : > { %p1848_p11 = pnand %p1847_p8, %p1841_p3 }
  0x7c   : > { %1851 = shalt.err (!%p1848_p11)
}
  0x7d   : > { %1637 = dma.hbm_to_vmem [thread:$0]  (!%p2081_p12), %s2406_s6, 128, %s297_s18, [#allocation6]  }
  0x7e   : > { %s1852_s23 = scalar_lea.hbm %s2408_s8, 128 }
  0x7f   : > { %p1853_p13 = scmp.ne.s32.totalorder %s2408_s8, %s1852_s23  ;;  %p1859_p5 = scmp.lt.u32.totalorder %s1852_s23, %s2408_s8 }
  0x81   : > { %p1855_p1 = pnand %p1853_p13, %p2097_p0 }
  0x83   : > { %p1856_p6 = pneg %p1855_p1 }
  0x85   : > { %p1861_p9 = pnand %p1859_p5, %p1856_p6 }
  0x87   : > { %1864 = shalt.err (!%p1861_p9)
}
  0x88   : > { %s1865_s16 = scalar_lea.vmem %s319_s22, 128  ;;  %p1873_p4 = scmp.lt.s32.totalorder %s319_s22, %s319_s22 }
  0x89   : > { %p1866_p10 = scmp.ne.s32.totalorder %s319_s22, %s1865_s16  ;;  %p1874_p7 = scmp.lt.s32.totalorder %s1865_s16, %s1865_s16 }
  0x8b   : > { %p1868_p2 = pnand %p1866_p10, %p2097_p0  ;;  %p1875_p8 = por %p1874_p7, %p1873_p4 }
  0x8d   : > { %p1869_p3 = pneg %p1868_p2 }
  0x8f   : > { %p1876_p11 = pnand %p1875_p8, %p1869_p3 }
  0x91   : > { %1879 = shalt.err (!%p1876_p11)
}
  0x92   : > { %1643 = dma.hbm_to_vmem [thread:$0]  (!%p2081_p12), %s2408_s8, 128, %s319_s22, [#allocation9]  }
  0x93   : > { %p2432_p13 = scmp.ne.s32.totalorder %s2427_s21, 0 }
  0x94   : > { %p2433_p1 = scmp.eq.s32.totalorder (!%p2432_p13), %s2045_s13, 0 }
  0x95   : > { %338 = sbr.rel (%p2432_p13) target bundleno = 2440 (0x988), region = 56 }
  0x9c   : > { %1925 = dma.done.wait (%p2433_p1), [#allocation3], 256   ;;  %p2434_p0 = pmov %p2433_p1 }
  0x9e   : > { %1927 = vsyncadd (%p2434_p0), [#allocation3], 4294967040  ;;  %p2435_p6 = pmov %p2434_p0 }
  0x9f   : > { %p2436_p5 = pmov %p2434_p0 }
  0xa0   : > { %1929 = dma.done.wait (%p2435_p6), [#allocation6], 256  }
  0xa1   : > { %1931 = vsyncadd (%p2436_p5), [#allocation6], 4294967040  ;;  %p2437_p9 = pmov %p2434_p0 }
  0xa2   : > { %p2438_p12 = pmov %p2434_p0 }
  0xa3   : > { %1933 = dma.done.wait (%p2437_p9), [#allocation9], 256  }
  0xa4   : > { %1935 = vsyncadd (%p2438_p12), [#allocation9], 4294967040  ;;  %p389_p10 = scmp.lt.s32.totalorder %s2045_s13, 1  ;;  %vm396_vm0 = vcmask 261120   ;;  %v1708_v3 = vld [vmem:[%s2401_s1] sm:$0xff]   ;;  %v1963_v4 = vmov 0.0   ;;  %v513_v45 = vlaneseq }
  0xa5   : > { %1506 = vmatprep.subr.bf16.mxu1 %v1963_v4  ;;  %vm1964_vm1 = vmmov 0   ;;  %v1709_v5 = vld [vmem:[%s2401_s1 + $0x8] sm:$0xff]   ;;  %1520 = vmatprep.subr.bf16.mxu0 %v1963_v4  ;;  %v478_v6 = vld [vmem:[#allocation8] sm:$0xff]  ;;  %s1965_s30 = smov 32   ;;  %v467_v8 = vld [vmem:[#allocation7] sm:$0xff]  ;;  %s1966_s20 = smov 96  }
  0xa6   : > { %s390_s21 = scalar_select %p389_p10, %s2045_s13, 1  ;;  %1510 = vmatprep.mubr.msk.bf16.mxu1 %vm1964_vm1, %v1963_v4  ;;  %1507 = vmatpush3.bf16.msra.mxu1 %v1708_v3  ;;  %v484_v7 = vld [vmem:[#allocation10] sm:$0xff]  ;;  %v465_v27 = vld [vmem:[#allocation5] sm:$0xff]  ;;  %vm528_vm2 = vcmask 64512   ;;  %v514_v46 = vshrl.u32 %v513_v45, 7  ;;  %v516_v47 = vand.u32 127, %v513_v45 }
  0xa7   : > { %1508 = vmatprep.subr.bf16.mxu1 %v1963_v4  ;;  %1522 = vmatprep.mubr.msk.bf16.mxu0 %vm1964_vm1, %v1963_v4  ;;  %s1967_s23 = smov 64   ;;  %s1968_s11 = smov 120   ;;  %v1971_v48 = vmov -1e+09   ;;  %vm758_vm4 = vcmask 1043456   ;;  %vm1258_vm5 = vcmask 523264  }
  0xa8   : > { %s1442_s26 = sshll.u32 %s390_s21, 3  ;;  %480 = vrot.lane.b32.xlu1 %v478_v6, %s1965_s30  ;;  %s1969_s15 = smov 112   ;;  %vm517_vm3 = vcmp.le.s32.totalorder %v516_v47, %v514_v46 }
  0xa9   : > { %s392_s29 = scalar_lea.vmem %s2400_s0, %s1442_s26  ;;  %s1970_s14 = smov 104   ;;  %v518_v49 = vsel %vm517_vm3, 0.0, %v1971_v48 }
  0xaa   : > { %v2214_v0 = vld [vmem:[%s392_s29] sm:$0xff]  ;;  %1509 = vmatpush3.bf16.msra.mxu1 %v1709_v5  ;;  %s1972_s17 = smov 80   ;;  %p2439_p3 = scmp.ne.s32.totalorder %s2424_s19, 0 }
  0xab   : > { %v395_v1 = vmul.f32 %v2214_v0, %v2214_v0  ;;  %1514 = vmatprep.subr.bf16.mxu1 %v1963_v4  ;;  %s1973_s22 = smov [#allocation11]  }
  0xac   : > { %469 = vrot.lane.b32.xlu1 %v467_v8, %s1967_s23  ;;  %s1884_s29 = sshll.u32 %s1973_s22, 4  ;;  %s1885_s29 = int_to_ptr.vmem [resolvable:$false] %s1884_s29 }
  0xad   : > { %v397_v2 = vsel %vm396_vm0, %v395_v1, 0.0  ;;  %s1886_s25 = scalar_lea.vmem %s1885_s29, 256 }
  0xae   : > { %398 = vadd.xlane.f32.xlu0 %v397_v2 }
  0xc4   : > { %486 = vrot.lane.b32.xlu0 %v484_v7, %s1966_s20 }
 0x11a   : > { %v481_v15 = vpop.permute.xlu1 %480 }
 0x11e   : > { %v470_v20 = vpop.permute.xlu1 %469 }
 0x13b   : > { %v399_v9 = vpop.xlane.xlu0 %398 }
 0x13c   : > { %v401_v10 = vmul.f32 0.03125, %v399_v9 }
 0x13e   : > { %v402_v11 = vadd.f32 1e-05, %v401_v10 }
 0x13f   : > { %v487_v16 = vpop.permute.xlu0 %486 }
 0x140   : > { %1716 = vrsqrt.f32 %v402_v11 }
 0x14a   : > { %v1717_v12 = vpop.eup %1716 }
 0x14b   : > { %v404_v13 = vmul.f32 %v1717_v12, %v2214_v0 }
 0x14d   : > { %v409_v14 = vpack.c.bf16 %v404_v13, %v404_v13 }
 0x14f   : > { %1511 = vmatmul.mubr.msk.bf16.vlgmr.msra.gmra.mrb[0].mxu1 %vm396_vm0, %v409_v14 }
 0x150   : > { %1516 = vmatprep.mubr.msk.bf16.mxu1 %vm1964_vm1, %v1963_v4 }
 0x222   : > { %v2239_v17 = vpop.f32.mrb[0].mxu1 }
 0x223   : > { %v489_v18 = vmul.f32 %v487_v16, %v2239_v17  ;;  %v1512_v19 = vpop.f32.mrb[1].mxu1  ;;  %v472_v23 = vmul.f32 %v470_v20, %v2239_v17  ;;  %v483_v24 = vmul.f32 %v481_v15, %v2239_v17  ;;  %v466_v30 = vmul.f32 %v465_v27, %v2239_v17 }
 0x224   : > { %v462_v21 = vpop.f32.mrb[2].mxu1  ;;  %v750_v62 = vpack.c.bf16 %v2239_v17, %v2239_v17 }
 0x225   : > { %v1513_v22 = vpop.f32.mrb[3].mxu1  ;;  %491 = vrot.lane.b32.xlu1 %v489_v18, %s1967_s23 }
 0x229   : > { %474 = vrot.lane.b32.xlu1 %v472_v23, %s1967_s23 }
 0x297   : > { %v492_v25 = vpop.permute.xlu1 %491 }
 0x298   : > { %v494_v26 = vadd.f32 %v492_v25, %v483_v24 }
 0x29a   : > { %506 = vrot.lane.b32.xlu1 %v494_v26, %s1968_s11  ;;  %v523_v28 = vpack.c.bf16 %v494_v26, %v494_v26 }
 0x29b   : > { %v475_v29 = vpop.permute.xlu1 %474 }
 0x29c   : > { %v477_v31 = vadd.f32 %v475_v29, %v466_v30 }
 0x29e   : > { %526 = vrot.lane.b32.xlu1 %v523_v28, %s1966_s20  ;;  %v519_v37 = vpack.c.bf16 %v477_v31, %v477_v31 }
 0x2a2   : > { %496 = vrot.lane.b32.xlu1 %v477_v31, %s1968_s11 }
 0x2a6   : > { %499 = vrot.lane.b32.xlu1 %v477_v31, %s1969_s15 }
 0x2aa   : > { %510 = vrot.lane.b32.xlu1 %v2239_v17, %s1968_s11 }
 0x30c   : > { %v507_v32 = vpop.permute.xlu1 %506 }
 0x30d   : > { %v524_v33 = vpack.c.bf16 %v507_v32, %v507_v32 }
 0x30f   : > { %619 = vrot.lane.b32.xlu0 %v524_v33, %s1966_s20 }
 0x310   : > { %v527_v34 = vpop.permute.xlu1 %526 }
 0x311   : > { %v533_v35 = vsel %vm528_vm2, %v527_v34, 0 }
 0x312   : > { %1515 = vmatpush3.bf16.xpose.msra.mxu1 %v533_v35  ;;  %1521 = vmatpush3.bf16.xpose.msra.mxu0 %v533_v35 }
 0x313   : > { %502 = vrot.lane.b32.xlu0 %v477_v31, %s1970_s14  ;;  %1526 = vmatprep.subr.bf16.mxu1 %v1963_v4  ;;  %s386_s14 = sand.u32 1, %s1946_s10  }
 0x314   : > { %v497_v36 = vpop.permute.xlu1 %496  ;;  %1532 = vmatprep.subr.bf16.mxu0 %v1963_v4 }
 0x315   : > { %v520_v38 = vpack.c.bf16 %v497_v36, %v497_v36 }
 0x318   : > { %v500_v41 = vpop.permute.xlu1 %499 }
 0x319   : > { %1517 = vmatmul.mubr.msk.bf16.vlgmr.msra.gmra.mrb[4].mxu1 %vm528_vm2, %v519_v37  ;;  %1523 = vmatmul.mubr.msk.bf16.vlgmr.msra.gmra.mrb[0].mxu0 %vm528_vm2, %v520_v38  ;;  %v521_v43 = vpack.c.bf16 %v500_v41, %v500_v41  ;;  %v949_v37 = vld [vmem:[%s2402_s2] sm:$0xf] }
 0x31a   : > { %1528 = vmatprep.mubr.msk.bf16.mxu1 %vm1964_vm1, %v1963_v4  ;;  %1534 = vmatprep.mubr.msk.bf16.mxu0 %vm1964_vm1, %v1963_v4  ;;  %v957_v41 = vsel %vm758_vm4, %v949_v37, 0 }
 0x31c   : > { %v511_v13 = vpop.permute.xlu1 %510 }
 0x31d   : > { %v751_v14 = vpack.c.bf16 %v511_v13, %v511_v13 }
 0x381   : > { %v620_v39 = vpop.permute.xlu0 %619 }
 0x382   : > { %v625_v40 = vsel %vm528_vm2, %v620_v39, 0 }
 0x383   : > { %1527 = vmatpush3.bf16.xpose.msra.mxu1 %v625_v40  ;;  %1533 = vmatpush3.bf16.xpose.msra.mxu0 %v625_v40 }
 0x384   : > { %1538 = vmatprep.subr.bf16.mxu1 %v1963_v4  ;;  %1544 = vmatprep.subr.bf16.mxu0 %v1963_v4 }
 0x385   : > { %v503_v42 = vpop.permute.xlu0 %502 }
 0x386   : > { %v522_v44 = vpack.c.bf16 %v503_v42, %v503_v42  ;;  %v950_v42 = vld [vmem:[%s2402_s2 + $0x4] sm:$0xf] }
 0x387   : > { %v1003_v46 = vsel %vm758_vm4, %v950_v42, 0 }
 0x38a   : > { %1529 = vmatmul.mubr.msk.bf16.vlgmr.msra.gmra.mrb[8].mxu1 %vm528_vm2, %v521_v43  ;;  %1535 = vmatmul.mubr.msk.bf16.vlgmr.msra.gmra.mrb[4].mxu0 %vm528_vm2, %v522_v44 }
 0x38b   : > { %1546 = vmatprep.mubr.msk.bf16.mxu0 %vm1964_vm1, %v1963_v4  ;;  %1540 = vmatprep.mubr.msk.bf16.mxu1 %vm1964_vm1, %v1963_v4 }
 0x3ec   : > { %v569_v50 = vpop.f32.mrb[4].mxu1  ;;  %v612_v51 = vpop.f32.mrb[0].mxu0 }
 0x3ed   : > { %v570_v52 = vadd.f32 %v569_v50, %v518_v49  ;;  %v613_v53 = vadd.f32 %v612_v51, %v518_v49  ;;  %v1518_v54 = vpop.f32.mrb[5].mxu1  ;;  %v1524_v55 = vpop.f32.mrb[1].mxu0  ;;  %v951_v51 = vld [vmem:[%s2402_s2 + $0x8] sm:$0xf] }
 0x3ee   : > { %v572_v56 = vpop.f32.mrb[6].mxu1  ;;  %v615_v57 = vpop.f32.mrb[2].mxu0 }
 0x3ef   : > { %v1519_v58 = vpop.f32.mrb[7].mxu1  ;;  %v1525_v59 = vpop.f32.mrb[3].mxu0  ;;  %v710_v60 = vsel %vm528_vm2, %v570_v52, -inf  ;;  %v713_v61 = vsel %vm528_vm2, %v613_v53, -inf  ;;  %v952_v56 = vld [vmem:[%s2402_s2 + $0xc] sm:$0xf] }
 0x3f0   : > { %711 = vmax.xlane.f32.xlu0 %v710_v60  ;;  %714 = vmax.xlane.f32.xlu1 %v713_v61 }
 0x401   : > { %753 = vrot.lane.b32.xlu1 %v750_v62, %s1972_s17 }
 0x45d   : > { %v661_v63 = vpop.f32.mrb[8].mxu1  ;;  %v704_v1 = vpop.f32.mrb[4].mxu0 }
 0x45e   : > { %v662_v2 = vadd.f32 %v661_v63, %v518_v49  ;;  %v1530_v3 = vpop.f32.mrb[9].mxu1  ;;  %v1536_v5 = vpop.f32.mrb[5].mxu0  ;;  %v705_v8 = vadd.f32 %v704_v1, %v518_v49  ;;  %v1049_v63 = vsel %vm758_vm4, %v951_v51, 0 }
 0x45f   : > { %v664_v6 = vpop.f32.mrb[10].mxu1  ;;  %v707_v7 = vpop.f32.mrb[6].mxu0  ;;  %v1095_v3 = vsel %vm758_vm4, %v952_v56, 0  ;;  %v1714_v56 = vld [vmem:[%s2404_s4 + $0x10] sm:$0xff]  }
 0x460   : > { %v1531_v9 = vpop.f32.mrb[11].mxu1  ;;  %v1537_v10 = vpop.f32.mrb[7].mxu0  ;;  %v716_v11 = vsel %vm528_vm2, %v662_v2, -inf  ;;  %v719_v12 = vsel %vm528_vm2, %v705_v8, -inf }
 0x461   : > { %717 = vmax.xlane.f32.xlu0 %v716_v11 }
 0x465   : > { %720 = vmax.xlane.f32.xlu0 %v719_v12 }
 0x47b   : > { %846 = vrot.lane.b32.xlu0 %v751_v14, %s1972_s17  ;;  %s1468_s17 = sshll.u32 %s2045_s13, 7  ;;  %s1305_s13 = scalar_lea.sflag [#allocation4], %s386_s14 }
 0x47c   : > { %s2357_s26 = scalar_lea.hbm %s2409_s9, %s1468_s17 }
 0x47d   : > { %v712_v15 = vpop.xlane.xlu0 %711  ;;  %v715_v16 = vpop.xlane.xlu1 %714 }
 0x47e   : > { %v722_v17 = vsub.f32 %v570_v52, %v712_v15  ;;  %v723_v18 = vsub.f32 %v613_v53, %v715_v16 }
 0x480   : > { %v726_v19 = vmul.f32 1.442695, %v722_v17  ;;  %v728_v20 = vmul.f32 1.442695, %v723_v18 }
 0x481   : > { %v754_v21 = vpop.permute.xlu1 %753 }
 0x482   : > { %1718 = vpow2.f32 %v726_v19  ;;  %v760_v22 = vsel %vm758_vm4, %v754_v21, 0 }
 0x483   : > { %1720 = vpow2.f32 %v728_v20  ;;  %1539 = vmatpush3.bf16.msra.mxu1 %v760_v22  ;;  %1545 = vmatpush3.bf16.msra.mxu0 %v760_v22 }
 0x484   : > { %1550 = vmatprep.subr.bf16.mxu1 %v1963_v4  ;;  %1556 = vmatprep.subr.bf16.mxu0 %v1963_v4 }
 0x48c   : > { %v1719_v23 = vpop.eup %1718 }
 0x48d   : > { %v1721_v24 = vpop.eup %1720  ;;  %v734_v25 = vsel %vm528_vm2, %v1719_v23, 0.0  ;;  %v746_v26 = vpack.c.bf16 %v1719_v23, %v1719_v23 }
 0x48e   : > { %735 = vadd.xlane.f32.xlu1 %v734_v25  ;;  %v747_v27 = vpack.c.bf16 %v1721_v24, %v1721_v24  ;;  %v737_v28 = vsel %vm528_vm2, %v1721_v24, 0.0 }
 0x48f   : > { %1541 = vmatmul.mubr.msk.bf16.vlgmr.msra.gmra.mrb[12].mxu1 %vm528_vm2, %v746_v26 }
 0x490   : > { %1547 = vmatmul.mubr.msk.bf16.vlgmr.msra.gmra.mrb[8].mxu0 %vm528_vm2, %v747_v27  ;;  %1552 = vmatprep.mubr.msk.bf16.mxu1 %vm1964_vm1, %v1963_v4 }
 0x491   : > { %1558 = vmatprep.mubr.msk.bf16.mxu0 %vm1964_vm1, %v1963_v4 }
 0x49a   : > { %738 = vadd.xlane.f32.xlu0 %v737_v28 }
 0x4ee   : > { %v718_v29 = vpop.xlane.xlu0 %717 }
 0x4ef   : > { %v724_v30 = vsub.f32 %v662_v2, %v718_v29 }
 0x4f1   : > { %v730_v31 = vmul.f32 1.442695, %v724_v30 }
 0x4f2   : > { %v721_v32 = vpop.xlane.xlu0 %720 }
 0x4f3   : > { %1722 = vpow2.f32 %v730_v31  ;;  %v725_v33 = vsub.f32 %v705_v8, %v721_v32 }
 0x4f5   : > { %v732_v34 = vmul.f32 1.442695, %v725_v33 }
 0x4f6   : > { %v847_v35 = vpop.permute.xlu0 %846 }
 0x4f7   : > { %1724 = vpow2.f32 %v732_v34  ;;  %v852_v36 = vsel %vm758_vm4, %v847_v35, 0 }
 0x4f8   : > { %1551 = vmatpush3.bf16.msra.mxu1 %v852_v36  ;;  %1557 = vmatpush3.bf16.msra.mxu0 %v852_v36 }
 0x4f9   : > { %1562 = vmatprep.subr.bf16.mxu1 %v1963_v4  ;;  %1568 = vmatprep.subr.bf16.mxu0 %v1963_v4 }
 0x4fd   : > { %v1723_v38 = vpop.eup %1722 }
 0x4fe   : > { %v740_v39 = vsel %vm528_vm2, %v1723_v38, 0.0  ;;  %v748_v40 = vpack.c.bf16 %v1723_v38, %v1723_v38 }
 0x4ff   : > { %741 = vadd.xlane.f32.xlu1 %v740_v39 }
 0x500   : > { %1553 = vmatmul.mubr.msk.bf16.vlgmr.msra.gmra.mrb[16].mxu1 %vm528_vm2, %v748_v40 }
 0x501   : > { %v1725_v43 = vpop.eup %1724  ;;  %1563 = vmatpush3.bf16.msra.mxu1 %v957_v41  ;;  %1564 = vmatprep.mubr.msk.bf16.mxu1 %vm1964_vm1, %v1963_v4 }
 0x502   : > { %v743_v44 = vsel %vm528_vm2, %v1725_v43, 0.0  ;;  %v749_v45 = vpack.c.bf16 %v1725_v43, %v1725_v43  ;;  %1574 = vmatprep.subr.bf16.mxu1 %v1963_v4 }
 0x503   : > { %744 = vadd.xlane.f32.xlu0 %v743_v44 }
 0x504   : > { %1559 = vmatmul.mubr.msk.bf16.vlgmr.msra.gmra.mrb[12].mxu0 %vm528_vm2, %v749_v45 }
 0x505   : > { %1569 = vmatpush3.bf16.msra.mxu0 %v1003_v46  ;;  %1570 = vmatprep.mubr.msk.bf16.mxu0 %vm1964_vm1, %v1963_v4 }
 0x506   : > { %1580 = vmatprep.subr.bf16.mxu0 %v1963_v4 }
 0x51b   : > { %v736_v47 = vpop.xlane.xlu1 %735 }
 0x51c   : > { %1726 = vrcp.f32 %v736_v47  ;;  %v1710_v47 = vld [vmem:[#allocation2] sm:$0xff]  }
 0x526   : > { %v1727_v49 = vpop.eup %1726 }
 0x527   : > { %v739_v48 = vpop.xlane.xlu0 %738 }
 0x528   : > { %1728 = vrcp.f32 %v739_v48  ;;  %v1711_v48 = vld [vmem:[#allocation2 + $0x8] sm:$0xff]  }
 0x532   : > { %v1729_v52 = vpop.eup %1728 }
 0x562   : > { %v796_v50 = vpop.f32.mrb[12].mxu1 }
 0x563   : > { %v941_v53 = vmul.f32 %v1727_v49, %v796_v50  ;;  %v839_v54 = vpop.f32.mrb[8].mxu0  ;;  %v1542_v55 = vpop.f32.mrb[13].mxu1 }
 0x564   : > { %v942_v57 = vmul.f32 %v1729_v52, %v839_v54  ;;  %v1548_v58 = vpop.f32.mrb[9].mxu0  ;;  %v799_v59 = vpop.f32.mrb[14].mxu1  ;;  %v1713_v55 = vld [vmem:[%s2404_s4 + $0x8] sm:$0xff]  }
 0x565   : > { %v945_v60 = vpack.c.bf16 %v941_v53, %v941_v53  ;;  %v842_v61 = vpop.f32.mrb[10].mxu0  ;;  %v1543_v62 = vpop.f32.mrb[15].mxu1 }
 0x566   : > { %v946_v1 = vpack.c.bf16 %v942_v57, %v942_v57  ;;  %v1549_v2 = vpop.f32.mrb[11].mxu0  ;;  %v1715_v57 = vld [vmem:[%s2404_s4 + $0x18] sm:$0xff]  }
 0x567   : > { %1565 = vmatmul.mubr.msk.bf16.vlgmr.msra.gmra.mrb[20].mxu1 %vm528_vm2, %v945_v60 }
 0x568   : > { %1571 = vmatmul.mubr.msk.bf16.vlgmr.msra.gmra.mrb[16].mxu0 %vm528_vm2, %v946_v1  ;;  %1575 = vmatpush3.bf16.msra.mxu1 %v1049_v63 }
 0x569   : > { %1581 = vmatpush3.bf16.msra.mxu0 %v1095_v3  ;;  %1576 = vmatprep.mubr.msk.bf16.mxu1 %vm1964_vm1, %v1963_v4 }
 0x56a   : > { %1582 = vmatprep.mubr.msk.bf16.mxu0 %vm1964_vm1, %v1963_v4  ;;  %1586 = vmatprep.subr.bf16.mxu1 %v1963_v4 }
 0x56b   : > { %1594 = vmatprep.subr.bf16.mxu0 %v1963_v4 }
 0x58c   : > { %v742_v5 = vpop.xlane.xlu1 %741 }
 0x58d   : > { %1730 = vrcp.f32 %v742_v5 }
 0x590   : > { %v745_v6 = vpop.xlane.xlu0 %744 }
 0x591   : > { %1732 = vrcp.f32 %v745_v6 }
 0x597   : > { %v1731_v7 = vpop.eup %1730 }
 0x59b   : > { %v1733_v14 = vpop.eup %1732 }
 0x5d3   : > { %v888_v8 = vpop.f32.mrb[16].mxu1 }
 0x5d4   : > { %v943_v9 = vmul.f32 %v1731_v7, %v888_v8  ;;  %v1554_v10 = vpop.f32.mrb[17].mxu1 }
 0x5d5   : > { %v891_v11 = vpop.f32.mrb[18].mxu1 }
 0x5d6   : > { %v947_v12 = vpack.c.bf16 %v943_v9, %v943_v9  ;;  %v1555_v13 = vpop.f32.mrb[19].mxu1 }
 0x5d7   : > { %v931_v15 = vpop.f32.mrb[12].mxu0 }
 0x5d8   : > { %v944_v16 = vmul.f32 %v1733_v14, %v931_v15  ;;  %v1560_v17 = vpop.f32.mrb[13].mxu0  ;;  %1577 = vmatmul.mubr.msk.bf16.vlgmr.msra.gmra.mrb[24].mxu1 %vm528_vm2, %v947_v12 }
 0x5d9   : > { %v934_v18 = vpop.f32.mrb[14].mxu0  ;;  %1590 = vmatprep.mubr.msk.bf16.mxu1 %vm1964_vm1, %v1963_v4  ;;  %1587 = vmatpush3.bf16.msra.mxu1 %v1710_v47 }
 0x5da   : > { %v948_v19 = vpack.c.bf16 %v944_v16, %v944_v16  ;;  %v1561_v20 = vpop.f32.mrb[15].mxu0  ;;  %1588 = vmatprep.subr.bf16.mxu1 %v1963_v4 }
 0x5dc   : > { %1583 = vmatmul.mubr.msk.bf16.vlgmr.msra.gmra.mrb[20].mxu0 %vm528_vm2, %v948_v19 }
 0x5dd   : > { %1602 = vmatprep.mubr.msk.bf16.mxu0 %vm1964_vm1, %v1963_v4  ;;  %1589 = vmatpush3.bf16.msra.mxu1 %v1711_v48 }
 0x63a   : > { %v993_v21 = vpop.f32.mrb[20].mxu1 }
 0x63b   : > { %v1137_v22 = vsel %vm396_vm0, %v993_v21, 0.0  ;;  %v1039_v23 = vpop.f32.mrb[16].mxu0  ;;  %v1566_v24 = vpop.f32.mrb[21].mxu1 }
 0x63c   : > { %v1138_v25 = vsel %vm396_vm0, %v1039_v23, 0.0  ;;  %v1572_v26 = vpop.f32.mrb[17].mxu0  ;;  %v996_v27 = vpop.f32.mrb[22].mxu1 }
 0x63d   : > { %v1139_v28 = vadd.f32 %v1138_v25, %v1137_v22  ;;  %v1042_v29 = vpop.f32.mrb[18].mxu0  ;;  %v1567_v30 = vpop.f32.mrb[23].mxu1 }
 0x63e   : > { %v1573_v31 = vpop.f32.mrb[19].mxu0 }
 0x6ab   : > { %v1085_v32 = vpop.f32.mrb[24].mxu1 }
 0x6ac   : > { %v1140_v33 = vsel %vm396_vm0, %v1085_v32, 0.0  ;;  %v1578_v34 = vpop.f32.mrb[25].mxu1 }
 0x6ad   : > { %v1141_v35 = vadd.f32 %v1140_v33, %v1139_v28  ;;  %v1088_v36 = vpop.f32.mrb[26].mxu1 }
 0x6ae   : > { %v1579_v37 = vpop.f32.mrb[27].mxu1 }
 0x6af   : > { %v1131_v38 = vpop.f32.mrb[20].mxu0 }
 0x6b0   : > { %v1142_v39 = vsel %vm396_vm0, %v1131_v38, 0.0  ;;  %v1584_v40 = vpop.f32.mrb[21].mxu0 }
 0x6b1   : > { %v1143_v41 = vadd.f32 %v1142_v39, %v1141_v35  ;;  %v1134_v42 = vpop.f32.mrb[22].mxu0 }
 0x6b2   : > { %v1585_v43 = vpop.f32.mrb[23].mxu0 }
 0x6b3   : > { %v1144_v44 = vadd.f32 %v1143_v41, %v2214_v0  ;;  %v1712_v0 = vld [vmem:[%s2404_s4] sm:$0xff]  }
 0x6b4   : > { %1595 = vmatpush3.bf16.msra.mxu0 %v1712_v0 }
 0x6b5   : > { %v1145_v45 = vmul.f32 %v1144_v44, %v1144_v44  ;;  %1596 = vmatprep.subr.bf16.mxu0 %v1963_v4 }
 0x6b7   : > { %v1146_v46 = vsel %vm396_vm0, %v1145_v45, 0.0 }
 0x6b8   : > { %1147 = vadd.xlane.f32.xlu1 %v1146_v46  ;;  %1597 = vmatpush3.bf16.msra.mxu0 %v1713_v55 }
 0x6b9   : > { %1598 = vmatprep.subr.bf16.mxu0 %v1963_v4 }
 0x6bc   : > { %1599 = vmatpush3.bf16.msra.mxu0 %v1714_v56 }
 0x6bd   : > { %1600 = vmatprep.subr.bf16.mxu0 %v1963_v4 }
 0x6c0   : > { %1601 = vmatpush3.bf16.msra.mxu0 %v1715_v57 }
 0x745   : > { %v1148_v49 = vpop.xlane.xlu1 %1147 }
 0x746   : > { %v1149_v50 = vmul.f32 0.03125, %v1148_v49 }
 0x748   : > { %v1150_v51 = vadd.f32 1e-05, %v1149_v50 }
 0x74a   : > { %1734 = vrsqrt.f32 %v1150_v51 }
 0x754   : > { %v1735_v52 = vpop.eup %1734 }
 0x755   : > { %v1152_v53 = vmul.f32 %v1735_v52, %v1144_v44 }
 0x757   : > { %v1157_v54 = vpack.c.bf16 %v1152_v53, %v1152_v53 }
 0x759   : > { %1591 = vmatmul.mubr.msk.bf16.vlgmr.msra.gmra.mrb[28].mxu1 %vm396_vm0, %v1157_v54 }
 0x82c   : > { %v1207_v58 = vpop.f32.mrb[28].mxu1 }
 0x82d   : > { %1221 = vrot.lane.b32.xlu0 %v1207_v58, %s1967_s23  ;;  %v1592_v59 = vpop.f32.mrb[29].mxu1  ;;  %v1461_v62 = vmul.f32 -1.442695, %v1207_v58  ;;  %s1441_s23 = sshll.u32 %s386_s14, 3 }
 0x82e   : > { %v1210_v60 = vpop.f32.mrb[30].mxu1  ;;  %s388_s16 = scalar_lea.vmem [#allocation11], %s1441_s23 }
 0x82f   : > { %v1593_v61 = vpop.f32.mrb[31].mxu1  ;;  %1736 = vpow2.f32 %v1461_v62  ;;  %s1318_s18 = sshll.u32 %s388_s16, 4  ;;  %s2359_s18 = int_to_ptr.vmem [resolvable:$true] %s1318_s18 }
 0x830   : > { %s1880_s24 = scalar_lea.vmem %s2359_s18, 128  ;;  %p1887_p8 = scmp.lt.s32.totalorder %s2359_s18, %s1885_s29 }
 0x831   : > { %p1881_p2 = scmp.ne.s32.totalorder %s2359_s18, %s1880_s24  ;;  %p1888_p11 = scmp.lt.s32.totalorder %s1886_s25, %s1880_s24 }
 0x833   : > { %p1882_p4 = pnand %p1881_p2, %p2439_p3  ;;  %p1889_p13 = por %p1888_p11, %p1887_p8 }
 0x835   : > { %p1883_p7 = pneg %p1882_p4 }
 0x837   : > { %p1890_p1 = pnand %p1889_p13, %p1883_p7 }
 0x839   : > { %v1737_v63 = vpop.eup %1736 }
 0x83a   : > { %v1216_v1 = vadd.f32 1.0, %v1737_v63 }
 0x83c   : > { %1738 = vrcp.f32 %v1216_v1 }
 0x846   : > { %v1739_v2 = vpop.eup %1738 }
 0x847   : > { %v1219_v4 = vmul.f32 %v1739_v2, %v1207_v58 }
 0x89f   : > { %v1222_v3 = vpop.permute.xlu0 %1221 }
 0x8a0   : > { %v1224_v5 = vmul.f32 %v1222_v3, %v1219_v4 }
 0x8a2   : > { %v1233_v6 = vpack.c.bf16 %v1224_v5, %v1224_v5 }
 0x8a4   : > { %1603 = vmatmul.mubr.msk.bf16.vlgmr.msra.gmra.mrb[24].mxu0 %vm1258_vm5, %v1233_v6 }
 0x977   : > { %v1296_v7 = vpop.f32.mrb[24].mxu0 }
 0x978   : > { %v1302_v8 = vadd.f32 %v1296_v7, %v1144_v44  ;;  %v1604_v9 = vpop.f32.mrb[25].mxu0 }
 0x979   : > { %v1299_v10 = vpop.f32.mrb[26].mxu0 }
 0x97a   : > { %v1605_v11 = vpop.f32.mrb[27].mxu0  ;;  %1303 = vst.msk [vmem:[%s388_s16] sm:$0xff] %vm396_vm0, %v1302_v8 }
 0x97b   : > { %1893 = shalt.err (!%p1890_p1)
}
 0x97c   : > { %s1894_s28 = scalar_lea.hbm %s2357_s26, 128  ;;  %s1898_s30 = scalar_lea.hbm %s2409_s9, 256 }
 0x97d   : > { %p1895_p0 = scmp.ne.s32.totalorder %s2357_s26, %s1894_s28  ;;  %p1899_p9 = scmp.lt.u32.totalorder %s2357_s26, %s2409_s9 }
 0x97e   : > { %p1900_p12 = scmp.lt.u32.totalorder %s1898_s30, %s1894_s28  ;;  %p1902_p2 = scmp.lt.u32.totalorder %s1894_s28, %s2357_s26 }
 0x97f   : > { %p1896_p6 = pnand %p1895_p0, %p2439_p3 }
 0x980   : > { %p1901_p10 = por %p1900_p12, %p1899_p9 }
 0x981   : > { %p1897_p5 = pneg %p1896_p6 }
 0x982   : > { %p1903_p4 = por %p1902_p2, %p1901_p10 }
 0x984   : > { %p1904_p7 = pnand %p1903_p4, %p1897_p5 }
 0x986   : > { %1907 = shalt.err (!%p1904_p7)
}
 0x987   : > { %1626 = dma.vmem_to_hbm [thread:$0]  (%p2439_p3), %s2359_s18, 128, %s2357_s26, %s1305_s13  }
 0x988 PF: > { %s2440_s15 = sld [smem:[#allocation16_spill]]  ;;  %s2441_s14 = sld [smem:[#allocation20_spill]] }
 0x989   : > { %p1658_p8 = scmp.ge.s32.totalorder %s1954_s12, 2 }
 0x98e   : > { %s1330_s23 = sand.u32 1, %s2440_s15   ;;  %p2442_p11 = scmp.ne.s32.totalorder %s2441_s14, 0 }
 0x98f   : > { %s1331_s17 = scalar_lea.sflag [#allocation4], %s1330_s23 }
 0x990   : > { %p1645_p13 = pnand %p1658_p8, %p2442_p11 }
 0x992   : > { %1937 = dma.done.wait (!%p1645_p13), %s1331_s17, 128  }
 0x993   : > { %1939 = vsyncadd (!%p1645_p13), %s1331_s17, 4294967168  ;;  %s2443_s12 = sld [smem:[#allocation18_spill]]  ;;  %s2444_s16 = sld [smem:[#allocation17_spill]] }
 0x994   : > { %s2445_s11 = sld [smem:[#allocation19_spill]]  ;;  %s2446_s30 = smov %s1946_s10 }
 0x999   : > { %p22_p1 = scmp.ge.s32.totalorder %s2443_s12, 4   ;;  %s2447_s10 = smov %s2444_s16 }
 0x99b   :  { %24 = sbr.rel (!%p22_p1) target bundleno = 9 (0x9), region = 112 }
 0x9a2   :  { %1336 = vsyncpa [#allocation3], 1 }
 0x9a3   :  { %1338 = vsyncpa [#allocation3 + $0x1], 1 }
 0x9a4   :  { %1339 = vsyncpa [#allocation6], 1 }
 0x9a5   :  { %1340 = vsyncpa [#allocation9], 1 }
 0x9a6   :  { %1341 = vsyncpa [#allocation4], 1 }
 0x9a7   :  { %1343 = vsyncpa [#allocation4 + $0x1], 1 }

</bundles_post_ra>
